<compile_context>
chip_gen: v7x
topology: tpu7x:2x2x1
jax: 0.10.0
libtpu: 0.0.40
codegen_flags: <defaults>
</compile_context>

<pallas_src>
import functools

import jax
import jax.numpy as jnp
from jax.experimental import pallas as pl
from jax.experimental.pallas import tpu as pltpu


def _round_up(x, m):
    return ((x + m - 1) // m) * m


def _concat_linear_kernel(x_ref, halo_ref, w_ref, b_ref, o_ref, *, concat_n, t_tile):
    # x_ref:    (t_tile, D)     bf16  padded-time rows [j*t_tile, (j+1)*t_tile)
    # halo_ref: (halo,   D)     bf16  padded-time rows [(j+1)*t_tile, (j+1)*t_tile + halo)
    # w_ref:    (concat_n*D, C) bf16  transposed Linear weight
    # b_ref:    (1, C)          f32
    # o_ref:    (t_tile, C)
    window = jnp.concatenate([x_ref[...], halo_ref[...]], axis=0)  # (t_tile+halo, D)
    two_mid = concat_n - 1
    # Context channel c at (padded) local time tt lives at window[tt + 2*mid - c].
    # Lane-concatenate the concat_n shifted bf16 slices -> (t_tile, concat_n*D)
    # and contract once on the MXU with K = concat_n*D (no per-channel f32
    # shift/accumulate traffic, full K utilization).
    lhs = jnp.concatenate(
        [window[two_mid - c: two_mid - c + t_tile, :] for c in range(concat_n)],
        axis=-1)
    acc = jnp.dot(lhs, w_ref[...], preferred_element_type=jnp.float32)
    o_ref[...] = (acc + b_ref[...]).astype(o_ref.dtype)


def phone_linear_concat_forward(features, weight, bias, concat_n, *, t_tile=None):
    """features: (B, T, D); weight: (C, concat_n*D) [torch layout]; bias: (C,)."""
    assert concat_n > 1 and concat_n % 2 == 1
    B, T, D = features.shape
    C = weight.shape[0]
    mid = concat_n // 2

    # ---- tiling --------------------------------------------------------------
    # Forward halo rows per tile (>= 2*mid), 16-aligned for bf16 sublane packing;
    # t_tile is a multiple of halo so the halo BlockSpec's block index is exact.
    halo = _round_up(max(2 * mid, 8), 16)
    if t_tile is None:
        # keep the in-kernel (t_tile, concat_n*D) bf16 LHS at <= ~4 MiB
        t_tile = min(1024, max(128, (4 << 20) // (2 * concat_n * D)))
        if B == 1:
            # v7x megacore: need >= 2 grid steps to occupy both TensorCores
            t_tile = min(t_tile, pl.cdiv(T, 2))
        t_tile = min(t_tile, T)
    t_tile = _round_up(max(int(t_tile), 1), halo)
    n_t = pl.cdiv(T, t_tile)
    hb = t_tile // halo                       # halo blocks per time tile (exact)

    # ---- input staging: single fused bf16-cast + edge-pad pass over x --------
    # x_full[:, p] == x[:, clamp(p - mid, 0, T - 1)] for every p in [0, total).
    total = n_t * t_tile + halo
    x_full = jnp.pad(features.astype(jnp.bfloat16),
                     ((0, 0), (mid, total - T - mid), (0, 0)), mode="edge")

    # ---- parameter staging: W^T (concat_n*D, C) bf16, f32 bias ---------------
    w_t = weight.T.astype(jnp.bfloat16)       # (concat_n*D, C)
    b = bias.astype(jnp.float32).reshape(1, C)

    kernel = functools.partial(
        _concat_linear_kernel, concat_n=concat_n, t_tile=t_tile)

    out = pl.pallas_call(
        kernel,
        out_shape=jax.ShapeDtypeStruct((B, n_t * t_tile, C), features.dtype),
        grid=(B, n_t),
        in_specs=[
            pl.BlockSpec((None, t_tile, D), lambda bb, j: (bb, j, 0)),
            pl.BlockSpec((None, halo, D), lambda bb, j: (bb, (j + 1) * hb, 0)),
            pl.BlockSpec((concat_n * D, C), lambda bb, j: (0, 0)),
            pl.BlockSpec((1, C), lambda bb, j: (0, 0)),
        ],
        out_specs=pl.BlockSpec((None, t_tile, C), lambda bb, j: (bb, j, 0)),
        compiler_params=pltpu.CompilerParams(
            dimension_semantics=("parallel", "parallel"),
            # well within v7x's 64 MiB VMEM (LHS budget ~4 MiB + tiles)
            vmem_limit_bytes=32 * 1024 * 1024,
        ),
    )(x_full, x_full, w_t, b)

    return out[:, :T, :]


def _reference_forward(features, weight, bias, concat_n):
    """Pure-JAX f32 reference mirroring the PyTorch module exactly."""
    B, T, D = features.shape
    mid = concat_n // 2
    t = jnp.arange(T)
    chans = []
    for c in range(concat_n):
        idx = jnp.clip(t + (mid - c), 0, T - 1)
        chans.append(features[:, idx, :])            # (B, T, D)
    feat = jnp.concatenate(chans, axis=-1)           # (B, T, concat_n*D)
    return feat @ weight.T + bias


if __name__ == "__main__":
    # Small, module-consistent shapes
    B, T, D = 2, 16, 32          # batch, seq_len, input_dim
    CONCAT_N = 5                 # odd, > 1
    C = 8                        # output_class_num

    key = jax.random.PRNGKey(0)
    k_x, k_w, k_b = jax.random.split(key, 3)

    x = jax.random.normal(k_x, (B, T, D), dtype=jnp.float32)

    # nn.Linear(input_dim*concat_n, C) init: U(-1/sqrt(fan_in), 1/sqrt(fan_in))
    fan_in = D * CONCAT_N
    bound = 1.0 / (fan_in ** 0.5)
    weight = jax.random.uniform(k_w, (C, fan_in), jnp.float32, -bound, bound)
    bias = jax.random.uniform(k_b, (C,), jnp.float32, -bound, bound)

    fwd = jax.jit(phone_linear_concat_forward, static_argnums=(3,))
    out = jax.block_until_ready(fwd(x, weight, bias, CONCAT_N))

    ref = _reference_forward(x, weight, bias, CONCAT_N)
    assert out.shape == (B, T, C), out.shape
    # bf16 matmul inputs with f32 accumulation -> loose tolerance
    # TODO(synk): provide an f32-input path if strict parity with the f32
    # PyTorch module is required.
    assert jnp.allclose(out, ref, atol=5e-2, rtol=5e-2), (
        float(jnp.max(jnp.abs(out - ref))))

    print("KERNEL_OK")
</pallas_src>

<mosaic_0001>
module attributes {stable_mosaic.version = 11 : i64} {
  func.func @_concat_linear_kernel(%arg0: i32, %arg1: i32, %arg2: memref<1x16x32xbf16, #tpu.memory_space<vmem>>, %arg3: memref<1x16x32xbf16, #tpu.memory_space<vmem>>, %arg4: memref<160x8xbf16, #tpu.memory_space<vmem>>, %arg5: memref<1x8xf32, #tpu.memory_space<vmem>>, %arg6: memref<1x16x8xf32, #tpu.memory_space<vmem>>) attributes {dimension_semantics = [#tpu.dimension_semantics<parallel>, #tpu.dimension_semantics<parallel>], iteration_bounds = array<i64: 2, 1>, scalar_prefetch = 0 : i64, scratch_operands = 0 : i64, tpu.core_type = #tpu.core_type<tc>, window_params = [{transform_indices = @transform_0, window_bounds = array<i64: 1, 16, 32>}, {transform_indices = @transform_1, window_bounds = array<i64: 1, 16, 32>}, {pipeline_mode = #tpu.pipeline_mode<synchronous>, transform_indices = @transform_2, window_bounds = array<i64: 160, 8>}, {pipeline_mode = #tpu.pipeline_mode<synchronous>, transform_indices = @transform_3, window_bounds = array<i64: 1, 8>}, {transform_indices = @transform_4, window_bounds = array<i64: 1, 16, 8>}]} {
    %c0 = arith.constant 0 : index
    %c0_0 = arith.constant 0 : index
    %c0_1 = arith.constant 0 : index
    %0 = vector.load %arg2[%c0, %c0_0, %c0_1] : memref<1x16x32xbf16, #tpu.memory_space<vmem>>, vector<1x16x32xbf16>
    %1 = vector.shape_cast %0 : vector<1x16x32xbf16> to vector<16x32xbf16>
    %c0_2 = arith.constant 0 : index
    %c0_3 = arith.constant 0 : index
    %c0_4 = arith.constant 0 : index
    %2 = vector.load %arg3[%c0_2, %c0_3, %c0_4] : memref<1x16x32xbf16, #tpu.memory_space<vmem>>, vector<1x16x32xbf16>
    %3 = vector.shape_cast %2 : vector<1x16x32xbf16> to vector<16x32xbf16>
    %4 = tpu.concatenate %1, %3 in 0 : vector<16x32xbf16>, vector<16x32xbf16> -> vector<32x32xbf16>
    %5 = vector.extract_strided_slice %4 {offsets = [4, 0], sizes = [16, 32], strides = [1, 1]} : vector<32x32xbf16> to vector<16x32xbf16>
    %6 = vector.extract_strided_slice %4 {offsets = [3, 0], sizes = [16, 32], strides = [1, 1]} : vector<32x32xbf16> to vector<16x32xbf16>
    %7 = vector.extract_strided_slice %4 {offsets = [2, 0], sizes = [16, 32], strides = [1, 1]} : vector<32x32xbf16> to vector<16x32xbf16>
    %8 = vector.extract_strided_slice %4 {offsets = [1, 0], sizes = [16, 32], strides = [1, 1]} : vector<32x32xbf16> to vector<16x32xbf16>
    %9 = vector.extract_strided_slice %4 {offsets = [0, 0], sizes = [16, 32], strides = [1, 1]} : vector<32x32xbf16> to vector<16x32xbf16>
    %10 = tpu.concatenate %5, %6, %7, %8, %9 in 1 : vector<16x32xbf16>, vector<16x32xbf16>, vector<16x32xbf16>, vector<16x32xbf16>, vector<16x32xbf16> -> vector<16x160xbf16>
    %c0_5 = arith.constant 0 : index
    %c0_6 = arith.constant 0 : index
    %11 = vector.load %arg4[%c0_5, %c0_6] : memref<160x8xbf16, #tpu.memory_space<vmem>>, vector<160x8xbf16>
    %cst = arith.constant dense<0.000000e+00> : vector<16x8xf32>
    %12 = tpu.matmul %10, %11, %cst {dimension_numbers = #tpu.dot_dimension_numbers<[1], [0], [0], [1], [0, 0, 1, 1], [], []>} : vector<16x160xbf16>, vector<160x8xbf16>, vector<16x8xf32> -> vector<16x8xf32>
    %c0_7 = arith.constant 0 : index
    %c0_8 = arith.constant 0 : index
    %13 = vector.load %arg5[%c0_7, %c0_8] : memref<1x8xf32, #tpu.memory_space<vmem>>, vector<1x8xf32>
    %14 = vector.broadcast %13 : vector<1x8xf32> to vector<16x8xf32>
    %15 = arith.addf %12, %14 : vector<16x8xf32>
    %c0_9 = arith.constant 0 : index
    %c0_10 = arith.constant 0 : index
    %c0_11 = arith.constant 0 : index
    %16 = vector.load %arg6[%c0_9, %c0_10, %c0_11] : memref<1x16x8xf32, #tpu.memory_space<vmem>>, vector<1x16x8xf32>
    %17 = vector.shape_cast %16 : vector<1x16x8xf32> to vector<16x8xf32>
    %18 = vector.shape_cast %15 : vector<16x8xf32> to vector<1x16x8xf32>
    tpu.vector_store %arg6[%c0_9, %c0_10, %c0_11], %18 {strides = array<i32>} : memref<1x16x8xf32, #tpu.memory_space<vmem>>, vector<1x16x8xf32>,
    return
  }
  func.func @transform_0(%arg0: i32, %arg1: i32) -> (i32, i32, i32) {
    %c0_i32 = arith.constant 0 : i32
    %c0_i32_0 = arith.constant 0 : i32
    return %arg0, %arg1, %c0_i32 : i32, i32, i32
  }
  func.func @transform_1(%arg0: i32, %arg1: i32) -> (i32, i32, i32) {
    %c1_i32 = arith.constant 1 : i32
    %0 = arith.addi %arg1, %c1_i32 : i32
    %c1_i32_0 = arith.constant 1 : i32
    %1 = arith.muli %0, %c1_i32_0 : i32
    %c0_i32 = arith.constant 0 : i32
    %c0_i32_1 = arith.constant 0 : i32
    return %arg0, %1, %c0_i32 : i32, i32, i32
  }
  func.func @transform_2(%arg0: i32, %arg1: i32) -> (i32, i32) {
    %c0_i32 = arith.constant 0 : i32
    %c0_i32_0 = arith.constant 0 : i32
    %c0_i32_1 = arith.constant 0 : i32
    return %c0_i32, %c0_i32_0 : i32, i32
  }
  func.func @transform_3(%arg0: i32, %arg1: i32) -> (i32, i32) {
    %c0_i32 = arith.constant 0 : i32
    %c0_i32_0 = arith.constant 0 : i32
    %c0_i32_1 = arith.constant 0 : i32
    return %c0_i32, %c0_i32_0 : i32, i32
  }
  func.func @transform_4(%arg0: i32, %arg1: i32) -> (i32, i32, i32) {
    %c0_i32 = arith.constant 0 : i32
    %c0_i32_0 = arith.constant 0 : i32
    return %arg0, %arg1, %c0_i32 : i32, i32, i32
  }
}

</mosaic_0001>

<bundles_post_ra>
// kernel: phone_linear_concat_forward.1
= control target key start
LH: loop header
LB: loop body
LE: loop exit
PB: predicated region body
PF: predicated region fallthrough
CT: control target
= control target key end

     0   :  { %s723_s15 = smov 0   ;;  %s725_s16 = smov 0   ;;  %s820_s0 = inlined_call_operand.vmem [shape: bf16[2,32,32], index: 0, kind: input, shape index: {}, may-alias: {0,1}]   ;;  %s821_s1 = inlined_call_operand.vmem [shape: bf16[2,32,32], index: 1, kind: input, shape index: {}, may-alias: {0,1}]   ;;  %s822_s2 = inlined_call_operand.vmem [shape: bf16[160,8], index: 2, kind: input, shape index: {}]   ;;  %s823_s3 = inlined_call_operand.vmem [shape: f32[1,8], index: 3, kind: input, shape index: {}]   ;;  %s824_s4 = inlined_call_operand.vmem [shape: f32[2,16,8], index: 4, kind: output, shape index: {}]  }
   0x1   :  { %s727_s17 = smov 0  }
   0x2 LB: > { %s26_s18 = sadd.s32 1, %s688_s16  ;;  %p601_p0 = scmp.ge.s32.totalorder %s692_s17, 1  ;;  %s692_s17 = sphi %s727_s17, %s14_s17   ;;  %s688_s16 = sphi %s725_s16, %s826_s16   ;;  %s684_s15 = sphi %s723_s15, %s825_s15  }
   0x3   : > { %p28_p1 = scmp.ge.s32.totalorder %s26_s18, 2  ;;  %p204_p2 = scmp.lt.s32.totalorder %s692_s17, 3 }
   0x5   : > { %s828_s18 = smov (%p28_p1, %s26_s18), 0  ;;  %p205_p3 = pnand %p601_p0, %p204_p2 }
   0x6   : > { %p249_p4 = scmp.lt.s32.totalorder (!%p205_p3), %s684_s15, 1  ;;  %v694_v0 = vmov (!%p205_p3), 0   ;;  %v660_v1 = vld [vmem:[%s822_s2] sm:$0xff] (!%p205_p3)   ;;  %vm295_vm0 = vsmask.f32 (!%p205_p3), 256  ;;  %v661_v2 = vld [vmem:[%s822_s2 + $0x8] sm:$0xff] (!%p205_p3)  }
   0x7   : > { %208 = sbr.rel (%p205_p3) target bundleno = 368 (0x170), region = 36  ;;  %448 = vmatprep.subr.bf16.mxu0 (!%p205_p3), %v694_v0  ;;  %vm323_vm1 = vsmask.f32 (!%p205_p3), 1280  ;;  %vm315_vm2 = vcmask (!%p205_p3), 1040384   ;;  %vm334_vm3 = vcmask (!%p205_p3), 261120   ;;  %v662_v8 = vld [vmem:[%s822_s2 + $0x10] sm:$0xff] (!%p205_p3)  }
   0x8   : > { %449 = vmatpush1.bf16.msra.mxu0 (!%p205_p3), %v660_v1  ;;  %s695_s7 = smov (!%p205_p3), 64   ;;  %v663_v20 = vld [vmem:[%s822_s2 + $0x18] sm:$0xff] (!%p205_p3)   ;;  %s696_s10 = smov (!%p205_p3), 32   ;;  %v664_v24 = vld [vmem:[%s822_s2 + $0x20] sm:$0xff] (!%p205_p3)   ;;  %v665_v25 = vld [vmem:[%s822_s2 + $0x28] sm:$0xff] (!%p205_p3)   ;;  %vm344_vm4 = vcmask (!%p205_p3), 785408  }
   0x9   : > { %450 = vmatprep.subr.bf16.mxu0 (!%p205_p3), %v694_v0  ;;  %s697_s13 = smov (!%p205_p3), 96   ;;  %v666_v26 = vld [vmem:[%s822_s2 + $0x30] sm:$0xff] (!%p205_p3)   ;;  %v667_v27 = vld [vmem:[%s822_s2 + $0x38] sm:$0xff] (!%p205_p3)   ;;  %v668_v28 = vld [vmem:[%s822_s2 + $0x40] sm:$0xff] (!%p205_p3)   ;;  %vm339_vm5 = vcmask (!%p205_p3), 523264   ;;  %vm378_vm6 = vcmask (!%p205_p3), 1045504  }
   0xa   : > { %v669_v29 = vld [vmem:[%s822_s2 + $0x48] sm:$0xff] (!%p205_p3)   ;;  %v610_v45 = vld [vmem:[%s823_s3] ss:$0 sm:$0xff] (!%p205_p3)  ;;  %vm489_vm7 = vcmask (!%p205_p3), 64512  }
   0xc   : > { %451 = vmatpush1.bf16.msra.mxu0 (!%p205_p3), %v661_v2 }
   0xd   : > { %452 = vmatprep.subr.bf16.mxu0 (!%p205_p3), %v694_v0 }
   0xe   : > { %s830_s15 = smov (!%p249_p4, %s684_s15), 1 }
   0xf   : > { %s745_s21 = sshll.u32 %s830_s15, 4 }
  0x10   : > { %s256_s26 = scalar_lea.vmem %s820_s0, %s745_s21  ;;  %s627_s27 = sadd.s32 8, %s745_s21  ;;  %453 = vmatpush1.bf16.msra.mxu0 %v662_v8 }
  0x11   : > { %v756_v3 = vld [vmem:[%s256_s26] sm:$0xff]   ;;  %s267_s30 = scalar_lea.vmem %s821_s1, %s627_s27  ;;  %454 = vmatprep.subr.bf16.mxu0 %v694_v0  ;;  %s278_s6 = scalar_lea.vmem %s824_s4, %s745_s21 }
  0x12   : > { %v659_v4 = vld [vmem:[%s267_s30] sm:$0xff]   ;;  %v316_v5 = vrot.slane %v756_v3, 7  ;;  %v297_v6 = vshrl.u32 %v756_v3, 16  ;;  %v300_v7 = vshll.u32 %v756_v3, 16  ;;  %622 = vmatprep.mubr.msk.bf16.mxu0 %vm334_vm3, %v756_v3 }
  0x13   : > { %v317_v9 = vrot.slane %v659_v4, 7  ;;  %v304_v10 = vshrl.u32 %v659_v4, 16  ;;  %v307_v11 = vshll.u32 %v659_v4, 16 }
  0x14   : > { %319 = vrot.lane.b32.xlu1 %v316_v5, %s695_s7  ;;  %v299_v12 = vrot.slane %v297_v6, 7  ;;  %v324_v13 = vrot.slane %v297_v6, 6  ;;  %v325_v14 = vrot.slane %v300_v7, 7  ;;  %455 = vmatpush1.bf16.msra.mxu0 %v663_v20 }
  0x15   : > { %v318_v15 = vsel %vm315_vm2, %v316_v5, %v317_v9  ;;  %v306_v16 = vrot.slane %v304_v10, 7  ;;  %v327_v17 = vrot.slane %v307_v11, 7  ;;  %456 = vmatprep.subr.bf16.mxu0 %v694_v0 }
  0x16   : > { %v302_v18 = vor.u32 %v300_v7, %v299_v12  ;;  %v326_v19 = vor.u32 %v325_v14, %v324_v13 }
  0x17   : > { %v309_v21 = vor.u32 %v307_v11, %v306_v16 }
  0x18   : > { %311 = vrot.lane.b32.xlu0 %v302_v18, %s696_s10  ;;  %321 = vrot.lane.b32.xlu1 %v318_v15, %s695_s7  ;;  %v328_v23 = vsel %vm323_vm1, %v326_v19, %v327_v17 }
  0x19   : > { %v310_v22 = vsel %vm295_vm0, %v299_v12, %v309_v21  ;;  %457 = vmatpush1.bf16.msra.mxu0 %v664_v24 }
  0x1a   : > { %458 = vmatprep.subr.bf16.mxu0 %v694_v0 }
  0x1c   : > { %313 = vrot.lane.b32.xlu0 %v310_v22, %s696_s10  ;;  %331 = vrot.lane.b32.xlu1 %v328_v23, %s697_s13 }
  0x1d   : > { %459 = vmatpush1.bf16.msra.mxu0 %v665_v25 }
  0x1e   : > { %460 = vmatprep.subr.bf16.mxu0 %v694_v0 }
  0x20   : > { %329 = vrot.lane.b32.xlu0 %v326_v19, %s697_s13 }
  0x21   : > { %461 = vmatpush1.bf16.msra.mxu0 %v666_v26 }
  0x22   : > { %462 = vmatprep.subr.bf16.mxu0 %v694_v0 }
  0x25   : > { %463 = vmatpush1.bf16.msra.mxu0 %v667_v27 }
  0x26   : > { %464 = vmatprep.subr.bf16.mxu0 %v694_v0 }
  0x29   : > { %465 = vmatpush1.bf16.msra.mxu0 %v668_v28 }
  0x2a   : > { %466 = vmatprep.subr.bf16.mxu0 %v694_v0 }
  0x2d   : > { %467 = vmatpush1.bf16.msra.mxu0 %v669_v29 }
  0x86   : > { %v320_v30 = vpop.permute.xlu1 %319 }
  0x8a   : > { %v312_v31 = vpop.permute.xlu0 %311  ;;  %v322_v32 = vpop.permute.xlu1 %321 }
  0x8b   : > { %v336_v35 = vsel %vm334_vm3, %v756_v3, %v312_v31 }
  0x8c   : > { %v341_v39 = vsel %vm339_vm5, %v336_v35, %v320_v30 }
  0x8e   : > { %v314_v33 = vpop.permute.xlu0 %313  ;;  %v332_v34 = vpop.permute.xlu1 %331 }
  0x8f   : > { %v338_v36 = vsel %vm334_vm3, %v659_v4, %v314_v33 }
  0x90   : > { %v343_v37 = vsel %vm339_vm5, %v338_v36, %v322_v32 }
  0x91   : > { %v348_v38 = vsel %vm344_vm4, %v343_v37, %v332_v34 }
  0x92   : > { %v330_v40 = vpop.permute.xlu0 %329  ;;  %v380_v42 = vrot.slane %v348_v38, 2 }
  0x93   : > { %v346_v41 = vsel %vm344_vm4, %v341_v39, %v330_v40 }
  0x94   : > { %v379_v43 = vrot.slane %v346_v41, 2 }
  0x96   : > { %v381_v44 = vsel %vm378_vm6, %v379_v43, %v380_v42 }
  0x97   : > { %481 = vmatmul.mubr.bf16.vlgmr.msra.gmra.mrb[0].mxu0 %v381_v44 }
 0x16a   : > { %v482_v46 = vpop.f32.mrb[0].mxu0 }
 0x16b   : > { %v483_v47 = vadd.f32 %v610_v45, %v482_v46  ;;  %v484_v48 = vpop.f32.mrb[1].mxu0 }
 0x16c   : > { %v485_v49 = vpop.f32.mrb[2].mxu0 }
 0x16d   : > { %490 = vst.msk [vmem:[%s278_s6] sm:$0xff] %vm489_vm7, %v483_v47  ;;  %v486_v50 = vadd.f32 %v610_v45, %v485_v49  ;;  %v487_v51 = vpop.f32.mrb[3].mxu0 }
 0x16f   : > { %491 = vst.msk [vmem:[%s278_s6 + $0x8] sm:$0xff] %vm489_vm7, %v486_v50 }
 0x170 PF: > { %s14_s17 = sadd.s32 1, %s692_s17   ;;  %s825_s15 = smov %s688_s16 }
 0x171   : > { %p11_p5 = scmp.ge.s32.totalorder %s14_s17, 4   ;;  %s826_s16 = smov %s828_s18 }
 0x173   :  { %13 = sbr.rel (!%p11_p5) target bundleno = 2 (0x2), region = 69 }

</bundles_post_ra>
